<compile_context>
chip_gen: v7x
topology: tpu7x:2x2x1
jax: 0.10.0
libtpu: 0.0.40
codegen_flags: <defaults>
</compile_context>

<pallas_src>
import math

import jax
import jax.numpy as jnp
from jax import lax
from jax.experimental import pallas as pl
from jax.experimental.pallas import tpu as pltpu

LANES = 128
SUBLANES = 8


def _round_up(x, m):
    return (x + m - 1) // m * m


def _sublane_granularity(dtypes):
    """Sublane multiple that keeps blocks native for packed (sub-32-bit) dtypes."""
    g = SUBLANES
    for dt in dtypes:
        it = jnp.dtype(dt).itemsize
        if it < 4:
            g = max(g, SUBLANES * (4 // it))
    return g


def _make_kernel(weight_bone, weight_soft_tissue, power, scale,
                 valid_rows, tile_rows, chunk_rows, needs_row_mask):
    wb_m1 = float(weight_bone) - 1.0
    ws_m1 = float(weight_soft_tissue) - 1.0
    sc = float(scale)
    is_int_power = float(power) == float(int(power))
    p_int = int(power) if is_int_power else None
    n_chunks = tile_rows // chunk_rows
    cr = chunk_rows

    def kernel(x_ref, t_ref, mb_ref, ms_ref, se_acc_ref, wd_acc_ref):
        i = pl.program_id(0)

        @pl.when(i == 0)
        def _():
            se_acc_ref[...] = jnp.zeros_like(se_acc_ref)
            wd_acc_ref[...] = jnp.zeros_like(wd_acc_ref)

        base_row = i * tile_rows

        def process(off):
            sl = pl.ds(off, cr)
            mb = mb_ref[sl, :].astype(jnp.float32)
            ms = ms_ref[sl, :].astype(jnp.float32)
            # Full weight is 1 + (wb-1)*mb + (ws-1)*ms; accumulate only the
            # delta so zero padding / masked rows contribute nothing.
            wd = wb_m1 * mb + ws_m1 * ms

            se = None
            if p_int != 0:  # power == 0 -> errors are identically 1, handled wrapper-side
                x = x_ref[sl, :].astype(jnp.float32)
                t = t_ref[sl, :].astype(jnp.float32)
                diff = (x - t) * sc
                if p_int is not None and p_int >= 1:
                    se = diff
                    for _ in range(p_int - 1):  # unrolled VPU multiplies (default p=2)
                        se = se * diff
                else:
                    # TODO(synk): non-integer / negative powers hit 0**p on padded
                    # elements and can produce inf/NaN (same as torch for zero diffs).
                    se = jnp.power(diff, float(power))

            if needs_row_mask:
                row = lax.broadcasted_iota(jnp.int32, (cr, LANES), 0)
                valid = (base_row + off + row) < valid_rows
                wd = jnp.where(valid, wd, 0.0)
                if se is not None:
                    se = jnp.where(valid, se, 0.0)

            # Fold (cr,128) -> (8,128) with sublane-group VPU adds; no XLU work.
            wd_acc_ref[...] += wd.reshape(cr // SUBLANES, SUBLANES, LANES).sum(axis=0)
            if se is not None:
                se_acc_ref[...] += se.reshape(cr // SUBLANES, SUBLANES, LANES).sum(axis=0)

        if n_chunks == 1:
            process(0)
        else:
            def body(c, carry):
                process(pl.multiple_of(c * cr, cr))
                return carry
            lax.fori_loop(0, n_chunks, body, 0)

    return kernel


def dual_enhanced_weighted_mse_loss(
    inputs,
    targets,
    mask_bone,
    mask_soft_tissue,
    *,
    weight_bone=10,
    weight_soft_tissue=5,
    power=2,
    scale=10.0,
    tile_rows=4096,
):
    arrays = (inputs, targets, mask_bone, mask_soft_tissue)
    assert inputs.shape == targets.shape == mask_bone.shape == mask_soft_tissue.shape
    n = int(inputs.size)
    assert n > 0

    gran = _sublane_granularity([a.dtype for a in arrays])
    rows = (n + LANES - 1) // LANES
    rows_p = _round_up(rows, gran)            # physical slab rows handed to pallas
    pad_elems = rows_p * LANES - n            # 0 whenever n is a multiple of gran*128

    bytes_per_row = LANES * sum(jnp.dtype(a.dtype).itemsize for a in arrays)
    # Keep double-buffered input windows under ~32 MiB so big tiles also fit
    # v7x's 64 MiB physical VMEM with headroom.
    max_tr = max(gran, ((32 << 20) // (2 * bytes_per_row)) // gran * gran)
    tr = min(_round_up(int(tile_rows), gran), max_tr, rows_p)
    tr = max(gran, tr // gran * gran)
    steps = (rows_p + tr - 1) // tr
    needs_row_mask = (rows_p % tr) != 0       # ragged last block -> mask garbage rows
    chunk = math.gcd(tr, 256)                 # multiple of gran; divides tr

    def prep(a):
        a = a.reshape(-1)                     # free (row-major collapse)
        if pad_elems:
            # TODO(synk): this pads (full copy) only when n is not a multiple of
            # gran*128; aligned sizes (the common case) take the zero-copy path.
            a = jnp.pad(a, (0, pad_elems))
        return a.reshape(rows_p, LANES)

    x2, t2, mb2, ms2 = (prep(a) for a in arrays)

    in_spec = pl.BlockSpec((tr, LANES), lambda i: (i, 0))
    out_spec = pl.BlockSpec((SUBLANES, LANES), lambda i: (0, 0))

    kernel = _make_kernel(weight_bone, weight_soft_tissue, power, scale,
                          rows_p, tr, chunk, needs_row_mask)

    is_int_power = float(power) == float(int(power))
    bytes_accessed = n * sum(jnp.dtype(a.dtype).itemsize for a in arrays)
    cost = pl.CostEstimate(flops=9 * n,
                           transcendentals=0 if is_int_power else n,
                           bytes_accessed=bytes_accessed)

    vmem_limit = int(min(48 << 20, max(32 << 20, 2 * tr * bytes_per_row + (8 << 20))))

    # TODO(synk): on v7x the reduction axis could be split across both TensorCores
    # via pltpu.CORE_PARALLEL / pl.core_map for up to ~2x; kept single-core here
    # for portability across v5e/v6e/v7x.
    se_acc, wd_acc = pl.pallas_call(
        kernel,
        out_shape=(
            jax.ShapeDtypeStruct((SUBLANES, LANES), jnp.float32),
            jax.ShapeDtypeStruct((SUBLANES, LANES), jnp.float32),
        ),
        grid_spec=pltpu.PrefetchScalarGridSpec(
            num_scalar_prefetch=0,
            grid=(steps,),
            in_specs=[in_spec, in_spec, in_spec, in_spec],
            out_specs=(out_spec, out_spec),
        ),
        compiler_params=pltpu.CompilerParams(
            dimension_semantics=("arbitrary",),
            vmem_limit_bytes=vmem_limit,
        ),
        cost_estimate=cost,
    )(x2, t2, mb2, ms2)

    inv_n = 1.0 / n
    if float(power) == 0.0:
        se_mean = jnp.float32(1.0)            # mean of ones, exactly (torch: 0**0 == 1)
    else:
        se_mean = jnp.sum(se_acc) * inv_n
    w_mean = 1.0 + jnp.sum(wd_acc) * inv_n
    return (w_mean * se_mean).astype(jnp.float32)


def _reference(inputs, targets, mask_bone, mask_soft_tissue,
               weight_bone=10, weight_soft_tissue=5, power=2, scale=10.0):
    mb = mask_bone.astype(inputs.dtype)
    ms = mask_soft_tissue.astype(inputs.dtype)
    weights = (jnp.ones_like(targets) * (1 - mb - ms)
               + weight_bone * mb + weight_soft_tissue * ms)
    squared_errors = jnp.mean(((inputs - targets) * scale) ** power)
    return jnp.mean(weights * squared_errors)


def _make_case(key, shape, mask_dtype=jnp.float32):
    k1, k2, k3, k4 = jax.random.split(key, 4)
    inputs = jax.random.normal(k1, shape, dtype=jnp.float32)
    targets = jax.random.normal(k2, shape, dtype=jnp.float32)
    mb_f = (jax.random.uniform(k3, shape) > 0.8).astype(jnp.float32)
    ms_f = (jax.random.uniform(k4, shape) > 0.7).astype(jnp.float32) * (1.0 - mb_f)
    return inputs, targets, mb_f.astype(mask_dtype), ms_f.astype(mask_dtype)


def _check(loss, ref):
    # f32 end-to-end reductions differ from XLA's reference by reduction order;
    # 1e-4 relative is the appropriate f32 tolerance for sums of this scale.
    assert jnp.allclose(loss, ref, rtol=1e-4, atol=1e-4), (loss, ref)


if __name__ == "__main__":
    key = jax.random.PRNGKey(0)
    k_a, k_b, k_c, k_d = jax.random.split(key, 4)

    # Case 1: NCHW, n multiple of 128, single tile, zero-copy path.
    x, t, mb, ms = _make_case(k_a, (2, 4, 16, 16))
    loss = jax.block_until_ready(dual_enhanced_weighted_mse_loss(x, t, mb, ms))
    _check(loss, _reference(x, t, mb, ms))

    # Case 2: bf16 masks (narrow-dtype streaming) + small tile -> multi-step
    # accumulation across the reduction grid axis.
    x, t, mb, ms = _make_case(k_b, (2, 4, 32, 32), mask_dtype=jnp.bfloat16)
    loss = jax.block_until_ready(
        dual_enhanced_weighted_mse_loss(x, t, mb, ms, tile_rows=16))
    _check(loss, _reference(x, t, mb, ms))

    # Case 3: awkward element count -> exercises the (tiny) zero-pad path.
    x, t, mb, ms = _make_case(k_c, (2, 3, 17, 19))
    loss = jax.block_until_ready(dual_enhanced_weighted_mse_loss(x, t, mb, ms))
    _check(loss, _reference(x, t, mb, ms))

    # Case 4: aligned n, rows not a multiple of the tile -> exercises the
    # in-kernel ragged-block row mask and the chunked fori_loop accumulation,
    # with no wrapper-side padding/copies.
    x, t, mb, ms = _make_case(k_d, (2, 4, 40, 32))
    loss = jax.block_until_ready(
        dual_enhanced_weighted_mse_loss(x, t, mb, ms, tile_rows=24))
    _check(loss, _reference(x, t, mb, ms))

    print("KERNEL_OK")
</pallas_src>

<mosaic_0001>
module attributes {stable_mosaic.version = 11 : i64} {
  func.func @kernel(%arg0: i32, %arg1: memref<16x128xf32, #tpu.memory_space<vmem>>, %arg2: memref<16x128xf32, #tpu.memory_space<vmem>>, %arg3: memref<16x128xf32, #tpu.memory_space<vmem>>, %arg4: memref<16x128xf32, #tpu.memory_space<vmem>>, %arg5: memref<8x128xf32, #tpu.memory_space<vmem>>, %arg6: memref<8x128xf32, #tpu.memory_space<vmem>>) attributes {dimension_semantics = [#tpu.dimension_semantics<arbitrary>], iteration_bounds = array<i64: 1>, scalar_prefetch = 0 : i64, scratch_operands = 0 : i64, tpu.core_type = #tpu.core_type<tc>, window_params = [{transform_indices = @transform_0, window_bounds = array<i64: 16, 128>}, {transform_indices = @transform_1, window_bounds = array<i64: 16, 128>}, {transform_indices = @transform_2, window_bounds = array<i64: 16, 128>}, {transform_indices = @transform_3, window_bounds = array<i64: 16, 128>}, {pipeline_mode = #tpu.pipeline_mode<synchronous>, transform_indices = @transform_4, window_bounds = array<i64: 8, 128>}, {pipeline_mode = #tpu.pipeline_mode<synchronous>, transform_indices = @transform_5, window_bounds = array<i64: 8, 128>}]} {
    %c0_i32 = arith.constant 0 : i32
    %0 = arith.cmpi eq, %arg0, %c0_i32 : i32
    %1 = arith.extui %0 : i1 to i32
    %c0_i32_0 = arith.constant 0 : i32
    %2 = arith.cmpi ne, %1, %c0_i32_0 : i32
    scf.if %2 {
      %cst_20 = arith.constant 0.000000e+00 : f32
      %26 = vector.broadcast %cst_20 : f32 to vector<8x128xf32>
      %c0_21 = arith.constant 0 : index
      %c0_22 = arith.constant 0 : index
      %27 = vector.load %arg5[%c0_21, %c0_22] : memref<8x128xf32, #tpu.memory_space<vmem>>, vector<8x128xf32>
      tpu.vector_store %arg5[%c0_21, %c0_22], %26 {strides = array<i32>} : memref<8x128xf32, #tpu.memory_space<vmem>>, vector<8x128xf32>,
      %cst_23 = arith.constant 0.000000e+00 : f32
      %28 = vector.broadcast %cst_23 : f32 to vector<8x128xf32>
      %c0_24 = arith.constant 0 : index
      %c0_25 = arith.constant 0 : index
      %29 = vector.load %arg6[%c0_24, %c0_25] : memref<8x128xf32, #tpu.memory_space<vmem>>, vector<8x128xf32>
      tpu.vector_store %arg6[%c0_24, %c0_25], %28 {strides = array<i32>} : memref<8x128xf32, #tpu.memory_space<vmem>>, vector<8x128xf32>,
    } else {
    }
    %c0 = arith.constant 0 : index
    %c0_1 = arith.constant 0 : index
    %3 = vector.load %arg3[%c0, %c0_1] : memref<16x128xf32, #tpu.memory_space<vmem>>, vector<16x128xf32>
    %c0_2 = arith.constant 0 : index
    %c0_3 = arith.constant 0 : index
    %4 = vector.load %arg4[%c0_2, %c0_3] : memref<16x128xf32, #tpu.memory_space<vmem>>, vector<16x128xf32>
    %cst = arith.constant 9.000000e+00 : f32
    %5 = vector.broadcast %cst : f32 to vector<16x128xf32>
    %6 = arith.mulf %5, %3 : vector<16x128xf32>
    %cst_4 = arith.constant 4.000000e+00 : f32
    %7 = vector.broadcast %cst_4 : f32 to vector<16x128xf32>
    %8 = arith.mulf %7, %4 : vector<16x128xf32>
    %9 = arith.addf %6, %8 : vector<16x128xf32>
    %c0_5 = arith.constant 0 : index
    %c0_6 = arith.constant 0 : index
    %10 = vector.load %arg1[%c0_5, %c0_6] : memref<16x128xf32, #tpu.memory_space<vmem>>, vector<16x128xf32>
    %c0_7 = arith.constant 0 : index
    %c0_8 = arith.constant 0 : index
    %11 = vector.load %arg2[%c0_7, %c0_8] : memref<16x128xf32, #tpu.memory_space<vmem>>, vector<16x128xf32>
    %12 = arith.subf %10, %11 : vector<16x128xf32>
    %cst_9 = arith.constant 1.000000e+01 : f32
    %13 = vector.broadcast %cst_9 : f32 to vector<16x128xf32>
    %14 = arith.mulf %12, %13 : vector<16x128xf32>
    %15 = arith.mulf %14, %14 : vector<16x128xf32>
    %c0_10 = arith.constant 0 : index
    %c0_11 = arith.constant 0 : index
    %16 = vector.load %arg6[%c0_10, %c0_11] : memref<8x128xf32, #tpu.memory_space<vmem>>, vector<8x128xf32>
    %17 = vector.shape_cast %9 : vector<16x128xf32> to vector<2x8x128xf32>
    %cst_12 = arith.constant dense<0.000000e+00> : vector<8x128xf32>
    %18 = vector.multi_reduction <add>, %17, %cst_12 [0] : vector<2x8x128xf32> to vector<8x128xf32>
    %19 = arith.addf %16, %18 : vector<8x128xf32>
    %c0_13 = arith.constant 0 : index
    %c0_14 = arith.constant 0 : index
    %20 = vector.load %arg6[%c0_13, %c0_14] : memref<8x128xf32, #tpu.memory_space<vmem>>, vector<8x128xf32>
    tpu.vector_store %arg6[%c0_13, %c0_14], %19 {strides = array<i32>} : memref<8x128xf32, #tpu.memory_space<vmem>>, vector<8x128xf32>,
    %c0_15 = arith.constant 0 : index
    %c0_16 = arith.constant 0 : index
    %21 = vector.load %arg5[%c0_15, %c0_16] : memref<8x128xf32, #tpu.memory_space<vmem>>, vector<8x128xf32>
    %22 = vector.shape_cast %15 : vector<16x128xf32> to vector<2x8x128xf32>
    %cst_17 = arith.constant dense<0.000000e+00> : vector<8x128xf32>
    %23 = vector.multi_reduction <add>, %22, %cst_17 [0] : vector<2x8x128xf32> to vector<8x128xf32>
    %24 = arith.addf %21, %23 : vector<8x128xf32>
    %c0_18 = arith.constant 0 : index
    %c0_19 = arith.constant 0 : index
    %25 = vector.load %arg5[%c0_18, %c0_19] : memref<8x128xf32, #tpu.memory_space<vmem>>, vector<8x128xf32>
    tpu.vector_store %arg5[%c0_18, %c0_19], %24 {strides = array<i32>} : memref<8x128xf32, #tpu.memory_space<vmem>>, vector<8x128xf32>,
    return
  }
  func.func @transform_0(%arg0: i32) -> (i32, i32) {
    %c0_i32 = arith.constant 0 : i32
    %c0_i32_0 = arith.constant 0 : i32
    return %arg0, %c0_i32 : i32, i32
  }
  func.func @transform_1(%arg0: i32) -> (i32, i32) {
    %c0_i32 = arith.constant 0 : i32
    %c0_i32_0 = arith.constant 0 : i32
    return %arg0, %c0_i32 : i32, i32
  }
  func.func @transform_2(%arg0: i32) -> (i32, i32) {
    %c0_i32 = arith.constant 0 : i32
    %c0_i32_0 = arith.constant 0 : i32
    return %arg0, %c0_i32 : i32, i32
  }
  func.func @transform_3(%arg0: i32) -> (i32, i32) {
    %c0_i32 = arith.constant 0 : i32
    %c0_i32_0 = arith.constant 0 : i32
    return %arg0, %c0_i32 : i32, i32
  }
  func.func @transform_4(%arg0: i32) -> (i32, i32) {
    %c0_i32 = arith.constant 0 : i32
    %c0_i32_0 = arith.constant 0 : i32
    %c0_i32_1 = arith.constant 0 : i32
    return %c0_i32, %c0_i32_0 : i32, i32
  }
  func.func @transform_5(%arg0: i32) -> (i32, i32) {
    %c0_i32 = arith.constant 0 : i32
    %c0_i32_0 = arith.constant 0 : i32
    %c0_i32_1 = arith.constant 0 : i32
    return %c0_i32, %c0_i32_0 : i32, i32
  }
}

</mosaic_0001>

<bundles_post_ra>
// kernel: tpu_custom_call.1
= control target key start
LH: loop header
LB: loop body
LE: loop exit
PB: predicated region body
PF: predicated region fallthrough
CT: control target
= control target key end

     0   :  { %11 = vsyncpa [#allocation3], 0  ;;  %s428_s0 = inlined_call_operand.hbm [shape: f32[16,128], index: 0, kind: input, shape index: {}]   ;;  %s429_s1 = inlined_call_operand.hbm [shape: f32[16,128], index: 1, kind: input, shape index: {}]   ;;  %s430_s2 = inlined_call_operand.hbm [shape: f32[16,128], index: 2, kind: input, shape index: {}]   ;;  %s431_s3 = inlined_call_operand.hbm [shape: f32[16,128], index: 3, kind: input, shape index: {}]   ;;  %s432_s4 = inlined_call_operand.hbm [shape: f32[8,128], index: 4, kind: output, shape index: {0}]   ;;  %s433_s5 = inlined_call_operand.hbm [shape: f32[8,128], index: 5, kind: output, shape index: {1}]  }
   0x1   :  { %12 = vsyncpa [#allocation6], 0 }
   0x2   :  { %13 = vsyncpa [#allocation9], 0 }
   0x3   :  { %14 = vsyncpa [#allocation4], 0 }
   0x4   :  { %15 = vsyncpa [#allocation12], 0  ;;  %s292_s18 = smov [#allocation5]   ;;  %s293_s20 = smov [#allocation2]  }
   0x5   :  { %s33_s19 = sshll.u32 %s292_s18, 4  ;;  %s21_s21 = sshll.u32 %s293_s20, 4  ;;  %s34_s19 = int_to_ptr.vmem [resolvable:$true] %s33_s19  ;;  %s330_s21 = int_to_ptr.vmem [resolvable:$true] %s21_s21 }
   0x6   :  { %s150_s24 = scalar_lea.hbm %s429_s1, 256 }
   0x7   :  { %p151_p0 = scmp.ne.s32.totalorder %s429_s1, %s150_s24  ;;  %p154_p1 = scmp.lt.u32.totalorder %s150_s24, %s429_s1 }
   0x9   :  { %p156_p2 = pnand %p154_p1, %p151_p0 }
   0xb   :  { %159 = shalt.err (!%p156_p2)
}
   0xc   :  { %s160_s29 = scalar_lea.vmem %s34_s19, 256  ;;  %p165_p4 = scmp.lt.s32.totalorder %s34_s19, %s34_s19 }
   0xd   :  { %p161_p3 = scmp.ne.s32.totalorder %s34_s19, %s160_s29  ;;  %p166_p5 = scmp.lt.s32.totalorder %s160_s29, %s160_s29 }
   0xf   :  { %p167_p6 = por %p166_p5, %p165_p4 }
  0x11   :  { %p168_p7 = pnand %p167_p6, %p161_p3 }
  0x13   :  { %171 = shalt.err (!%p168_p7)
}
  0x14   :  { %s294_s30 = smov 128   ;;  %s295_s6 = smov 8  }
  0x15   :  { %39 = dma.hbm_to_vmem [thread:$0]  %s429_s1, 256, %s34_s19, [#allocation6], %s294_s30, %s294_s30, %s295_s6  }
  0x16   :  { %s172_s11 = scalar_lea.hbm %s428_s0, 256 }
  0x17   :  { %p173_p8 = scmp.ne.s32.totalorder %s428_s0, %s172_s11  ;;  %p176_p9 = scmp.lt.u32.totalorder %s172_s11, %s428_s0 }
  0x19   :  { %p178_p10 = pnand %p176_p9, %p173_p8 }
  0x1b   :  { %181 = shalt.err (!%p178_p10)
}
  0x1c   :  { %s182_s16 = scalar_lea.vmem %s330_s21, 256  ;;  %p187_p12 = scmp.lt.s32.totalorder %s330_s21, %s330_s21 }
  0x1d   :  { %p183_p11 = scmp.ne.s32.totalorder %s330_s21, %s182_s16  ;;  %p188_p13 = scmp.lt.s32.totalorder %s182_s16, %s182_s16 }
  0x1f   :  { %p189_p0 = por %p188_p13, %p187_p12 }
  0x21   :  { %p190_p1 = pnand %p189_p0, %p183_p11 }
  0x23   :  { %193 = shalt.err (!%p190_p1)
}
  0x24   :  { %27 = dma.hbm_to_vmem [thread:$0]  %s428_s0, 256, %s330_s21, [#allocation3], %s294_s30, %s294_s30, %s295_s6  }
  0x25   :  { %s296_s18 = smov [#allocation7]   ;;  %s297_s20 = smov [#allocation8]  }
  0x26   :  { %s45_s19 = sshll.u32 %s296_s18, 4  ;;  %s57_s22 = sshll.u32 %s297_s20, 4  ;;  %s46_s19 = int_to_ptr.vmem [resolvable:$true] %s45_s19  ;;  %s367_s22 = int_to_ptr.vmem [resolvable:$true] %s57_s22 }
  0x27   :  { %s194_s25 = scalar_lea.hbm %s430_s2, 256 }
  0x28   :  { %p195_p2 = scmp.ne.s32.totalorder %s430_s2, %s194_s25  ;;  %p198_p3 = scmp.lt.u32.totalorder %s194_s25, %s430_s2 }
  0x2a   :  { %p200_p4 = pnand %p198_p3, %p195_p2 }
  0x2c   :  { %203 = shalt.err (!%p200_p4)
}
  0x2d   :  { %s204_s0 = scalar_lea.vmem %s46_s19, 256  ;;  %p209_p6 = scmp.lt.s32.totalorder %s46_s19, %s46_s19 }
  0x2e   :  { %p205_p5 = scmp.ne.s32.totalorder %s46_s19, %s204_s0  ;;  %p210_p7 = scmp.lt.s32.totalorder %s204_s0, %s204_s0 }
  0x30   :  { %p211_p8 = por %p210_p7, %p209_p6 }
  0x32   :  { %p212_p9 = pnand %p211_p8, %p205_p5 }
  0x34   :  { %215 = shalt.err (!%p212_p9)
}
  0x35   :  { %51 = dma.hbm_to_vmem [thread:$0]  %s430_s2, 256, %s46_s19, [#allocation6], %s294_s30, %s294_s30, %s295_s6  }
  0x36   :  { %s216_s10 = scalar_lea.hbm %s431_s3, 256 }
  0x37   :  { %p217_p10 = scmp.ne.s32.totalorder %s431_s3, %s216_s10  ;;  %p220_p11 = scmp.lt.u32.totalorder %s216_s10, %s431_s3 }
  0x39   :  { %p222_p12 = pnand %p220_p11, %p217_p10 }
  0x3b   :  { %225 = shalt.err (!%p222_p12)
}
  0x3c   :  { %s226_s15 = scalar_lea.vmem %s367_s22, 256  ;;  %p231_p0 = scmp.lt.s32.totalorder %s367_s22, %s367_s22 }
  0x3d   :  { %p227_p13 = scmp.ne.s32.totalorder %s367_s22, %s226_s15  ;;  %p232_p1 = scmp.lt.s32.totalorder %s226_s15, %s226_s15 }
  0x3f   :  { %p233_p2 = por %p232_p1, %p231_p0 }
  0x41   :  { %p234_p3 = pnand %p233_p2, %p227_p13 }
  0x43   :  { %237 = shalt.err (!%p234_p3)
}
  0x44   :  { %63 = dma.hbm_to_vmem [thread:$0]  %s431_s3, 256, %s367_s22, [#allocation9], %s294_s30, %s294_s30, %s295_s6  }
  0x45   :  { %282 = dma.done.wait [#allocation3], 256  }
  0x46   :  { %283 = vsyncadd [#allocation3], 4294967040 }
  0x47   :  { %284 = dma.done.wait [#allocation6], 512  }
  0x48   :  { %285 = vsyncadd [#allocation6], 4294966784 }
  0x49   :  { %286 = dma.done.wait [#allocation9], 256  }
  0x4a   :  { %287 = vsyncadd [#allocation9], 4294967040  ;;  %v82_v0 = vld [vmem:[#allocation7] sm:$0xff]  ;;  %v83_v1 = vld [vmem:[#allocation7 + $0x8] sm:$0xff]  ;;  %s298_s3 = smov [#allocation11]   ;;  %s299_s6 = smov [#allocation10]  }
  0x4b   :  { %v84_v2 = vld [vmem:[#allocation8] sm:$0xff]  ;;  %v85_v3 = vld [vmem:[#allocation8 + $0x8] sm:$0xff]  ;;  %v86_v4 = vmul.f32 9.0, %v82_v0  ;;  %v87_v5 = vmul.f32 9.0, %v83_v1  ;;  %v92_v7 = vld [vmem:[#allocation2] sm:$0xff]  ;;  %s126_s30 = sshll.u32 %s298_s3, 4  ;;  %s127_s30 = int_to_ptr.vmem [resolvable:$true] %s126_s30 }
  0x4c   :  { %v88_v6 = vmul.f32 4.0, %v84_v2  ;;  %v93_v8 = vld [vmem:[#allocation2 + $0x8] sm:$0xff]  ;;  %v89_v9 = vmul.f32 4.0, %v85_v3  ;;  %v94_v10 = vld [vmem:[#allocation5] sm:$0xff]  ;;  %v95_v11 = vld [vmem:[#allocation5 + $0x8] sm:$0xff]  ;;  %s116_s1 = sshll.u32 %s299_s6, 4  ;;  %p243_p5 = scmp.lt.s32.totalorder %s127_s30, %s127_s30  ;;  %s117_s1 = int_to_ptr.vmem [resolvable:$true] %s116_s1 }
  0x4d   :  { %v96_v13 = vsub.f32 %v92_v7, %v94_v10  ;;  %v97_v14 = vsub.f32 %v93_v8, %v95_v11  ;;  %s238_s17 = scalar_lea.vmem %s127_s30, 128 }
  0x4e   :  { %v90_v12 = vadd.f32 %v88_v6, %v86_v4  ;;  %v91_v15 = vadd.f32 %v89_v9, %v87_v5  ;;  %p239_p4 = scmp.ne.s32.totalorder %s127_s30, %s238_s17  ;;  %p244_p6 = scmp.lt.s32.totalorder %s238_s17, %s238_s17 }
  0x4f   :  { %v98_v16 = vmul.f32 10.0, %v96_v13  ;;  %v99_v17 = vmul.f32 10.0, %v97_v14 }
  0x50   :  { %v103_v18 = vadd.f32 %v91_v15, %v90_v12  ;;  %p245_p7 = por %p244_p6, %p243_p5 }
  0x51   :  { %v100_v19 = vmul.f32 %v98_v16, %v98_v16  ;;  %v101_v20 = vmul.f32 %v99_v17, %v99_v17 }
  0x52   :  { %105 = vst [vmem:[#allocation11] sm:$0xff] %v103_v18  ;;  %p246_p8 = pnand %p245_p7, %p239_p4 }
  0x53   :  { %v107_v21 = vadd.f32 %v101_v20, %v100_v19 }
  0x54   :  { %249 = shalt.err (!%p246_p8)
}
  0x55   :  { %s250_s20 = scalar_lea.hbm %s433_s5, 128 }
  0x56   :  { %p251_p9 = scmp.ne.s32.totalorder %s433_s5, %s250_s20  ;;  %p254_p10 = scmp.lt.u32.totalorder %s250_s20, %s433_s5 }
  0x58   :  { %p256_p11 = pnand %p254_p10, %p251_p9 }
  0x5a   :  { %259 = shalt.err (!%p256_p11)
}
  0x5b   :  { %129 = dma.vmem_to_hbm [thread:$0]  %s127_s30, 128, %s433_s5, [#allocation12]   ;;  %109 = vst [vmem:[#allocation10] sm:$0xff] %v107_v21 }
  0x5c   :  { %s260_s28 = scalar_lea.vmem %s117_s1, 128  ;;  %p265_p13 = scmp.lt.s32.totalorder %s117_s1, %s117_s1 }
  0x5d   :  { %p261_p12 = scmp.ne.s32.totalorder %s117_s1, %s260_s28  ;;  %p266_p0 = scmp.lt.s32.totalorder %s260_s28, %s260_s28 }
  0x5f   :  { %p267_p1 = por %p266_p0, %p265_p13 }
  0x61   :  { %p268_p2 = pnand %p267_p1, %p261_p12 }
  0x63   :  { %271 = shalt.err (!%p268_p2)
}
  0x64   :  { %s272_s21 = scalar_lea.hbm %s432_s4, 128 }
  0x65   :  { %p273_p3 = scmp.ne.s32.totalorder %s432_s4, %s272_s21  ;;  %p276_p4 = scmp.lt.u32.totalorder %s272_s21, %s432_s4 }
  0x67   :  { %p278_p5 = pnand %p276_p4, %p273_p3 }
  0x69   :  { %281 = shalt.err (!%p278_p5)
}
  0x6a   :  { %119 = dma.vmem_to_hbm [thread:$0]  %s117_s1, 128, %s432_s4, [#allocation4]  }
  0x6b   :  { %288 = dma.done.wait [#allocation4], 128  }
  0x6c   :  { %289 = vsyncadd [#allocation4], 4294967168 }
  0x6d   :  { %290 = dma.done.wait [#allocation12], 128  }
  0x6e   :  { %291 = vsyncadd [#allocation12], 4294967168 }
  0x6f   :  { %136 = vsyncpa [#allocation3], 1 }
  0x70   :  { %137 = vsyncpa [#allocation6], 1 }
  0x71   :  { %138 = vsyncpa [#allocation9], 1 }
  0x72   :  { %139 = vsyncpa [#allocation4], 1 }
  0x73   :  { %140 = vsyncpa [#allocation12], 1 }

</bundles_post_ra>
